<compile_context>
chip_gen: v7x
topology: tpu7x:2x2x1
jax: 0.10.0
libtpu: 0.0.40
codegen_flags: <defaults>
</compile_context>

<pallas_src>
import functools

import jax
import jax.numpy as jnp
from jax.experimental import pallas as pl
from jax.experimental.pallas import tpu as pltpu


def conv1x1_add_relu_kernel(x_ref, w_ref, b_ref, x2_ref, o_ref):
    # x_ref : (Cin,  TILE_S)  zero-padded input pixels, channels on sublanes
    # w_ref : (Cout, Cin)     1x1 conv weight (tiny, resident block)
    # b_ref : (Cout, 1)       bias
    # x2_ref: (Cout, TILE_S)  residual add input
    # o_ref : (Cout, TILE_S)  lane-dense output tile
    cin = x_ref.shape[0]
    w = w_ref[...]                       # load the tiny weight once per tile
    acc = b_ref[...] + x2_ref[...]       # bias broadcast over lanes
    # Unrolled VPU FMAs over Cin (=3): no MXU warm-up/drain, exact f32.
    # Note: a stride-0 sublane-broadcast load (pl.ds(c, Cout, stride=0)) was
    # suggested, but size > the channel dim (3) makes that slice bounds-risky;
    # the XLU broadcast below is ~50 cycles/tile and nowhere near binding.
    for c in range(cin):
        acc = acc + w[:, c:c + 1] * x_ref[c:c + 1, :]
    o_ref[...] = jnp.maximum(acc, 0.0).astype(o_ref.dtype)


@functools.partial(jax.jit, static_argnames=("max_tile_s",))
def model2_forward(x1, x2, weight, bias, *, max_tile_s=32768):
    """x1: (B, Cin, H, W) f32; x2: (B, Cout, H+2, W+2) f32.
    weight: (Cout, Cin, 1, 1); bias: (Cout,). Returns (B, Cout, H+2, W+2)."""
    B, Cin, H, W = x1.shape
    Cout = weight.shape[0]
    Hp, Wp = H + 2, W + 2
    assert x2.shape == (B, Cout, Hp, Wp), "x2 must match the conv output shape"
    S = Hp * Wp

    # Conv2d(kernel=1, padding=1): zero-pad spatially, then pointwise mix.
    # Reshapes below are contiguous (free); no transposes, no extra HBM pass.
    x1p = jnp.pad(x1, ((0, 0), (0, 0), (1, 1), (1, 1))).reshape(B, Cin, S)
    x2r = x2.reshape(B, Cout, S)
    w = weight.reshape(Cout, Cin)
    b = bias.reshape(Cout, 1)

    if S <= max_tile_s:
        tile_s = S                          # one spatial step; full-dim block, no pad
    else:
        tile_s = (max_tile_s // 128) * 128  # lane-dense tile; ragged last block masked
    num_s = pl.cdiv(S, tile_s)

    cost = pl.CostEstimate(
        flops=2 * B * Cout * Cin * S,
        transcendentals=0,
        bytes_accessed=4 * (B * Cin * S + 2 * B * Cout * S + Cout * Cin + Cout),
    )

    out = pl.pallas_call(
        conv1x1_add_relu_kernel,
        out_shape=jax.ShapeDtypeStruct((B, Cout, S), x1.dtype),
        grid=(B, num_s),
        in_specs=[
            pl.BlockSpec((None, Cin, tile_s), lambda bb, i: (bb, 0, i)),   # x1p
            pl.BlockSpec((Cout, Cin), lambda bb, i: (0, 0)),               # weight
            pl.BlockSpec((Cout, 1), lambda bb, i: (0, 0)),                 # bias
            pl.BlockSpec((None, Cout, tile_s), lambda bb, i: (bb, 0, i)),  # x2
        ],
        out_specs=pl.BlockSpec((None, Cout, tile_s), lambda bb, i: (bb, 0, i)),
        compiler_params=pltpu.CompilerParams(
            dimension_semantics=("parallel", "parallel"),
        ),
        cost_estimate=cost,
    )(x1p, w, b, x2r)

    # TODO(synk): if a consumer accepts the flattened (B, Cout, S) layout,
    # this reshape can be skipped too (it is free anyway — no transpose).
    return out.reshape(B, Cout, Hp, Wp)


if __name__ == "__main__":
    key = jax.random.PRNGKey(0)
    k1, k2, k3, k4 = jax.random.split(key, 4)

    # Small shapes consistent with the module (conv 3->8, k=1, padding=1).
    # x2 is given the conv-output shape so the add is well-defined.
    B, Cin, Cout, H, W = 2, 3, 8, 32, 32
    x1 = jax.random.normal(k1, (B, Cin, H, W), dtype=jnp.float32)
    x2 = jax.random.normal(k2, (B, Cout, H + 2, W + 2), dtype=jnp.float32)

    # deterministic Conv2d(3, 8, 1) parameters (PyTorch-style uniform fan-in init)
    fan_in = Cin * 1 * 1
    bound = 1.0 / (fan_in ** 0.5)
    weight = jax.random.uniform(k3, (Cout, Cin, 1, 1), jnp.float32, -bound, bound)
    bias = jax.random.uniform(k4, (Cout,), jnp.float32, -bound, bound)

    out = model2_forward(x1, x2, weight, bias)
    jax.block_until_ready(out)

    # pure-JAX reference: relu(conv1x1(pad(x1)) + bias + x2)
    x1p = jnp.pad(x1, ((0, 0), (0, 0), (1, 1), (1, 1)))
    ref = jnp.einsum("oc,bchw->bohw", weight.reshape(Cout, Cin), x1p)
    ref = ref + bias[None, :, None, None] + x2
    ref = jnp.maximum(ref, 0.0)

    assert out.shape == (B, Cout, H + 2, W + 2)
    assert jnp.allclose(out, ref, atol=1e-5, rtol=1e-5)

    print("KERNEL_OK")
</pallas_src>

<mosaic_0001>
module attributes {stable_mosaic.version = 11 : i64} {
  func.func @conv1x1_add_relu_kernel(%arg0: i32, %arg1: i32, %arg2: memref<1x3x1156xf32, #tpu.memory_space<vmem>>, %arg3: memref<8x3xf32, #tpu.memory_space<vmem>>, %arg4: memref<8x1xf32, #tpu.memory_space<vmem>>, %arg5: memref<1x8x1156xf32, #tpu.memory_space<vmem>>, %arg6: memref<1x8x1156xf32, #tpu.memory_space<vmem>>) attributes {dimension_semantics = [#tpu.dimension_semantics<parallel>, #tpu.dimension_semantics<parallel>], iteration_bounds = array<i64: 2, 1>, scalar_prefetch = 0 : i64, scratch_operands = 0 : i64, tpu.core_type = #tpu.core_type<tc>, window_params = [{transform_indices = @transform_0, window_bounds = array<i64: 1, 3, 1156>}, {pipeline_mode = #tpu.pipeline_mode<synchronous>, transform_indices = @transform_1, window_bounds = array<i64: 8, 3>}, {pipeline_mode = #tpu.pipeline_mode<synchronous>, transform_indices = @transform_2, window_bounds = array<i64: 8, 1>}, {transform_indices = @transform_3, window_bounds = array<i64: 1, 8, 1156>}, {transform_indices = @transform_4, window_bounds = array<i64: 1, 8, 1156>}]} {
    %c0 = arith.constant 0 : index
    %c0_0 = arith.constant 0 : index
    %0 = vector.load %arg3[%c0, %c0_0] : memref<8x3xf32, #tpu.memory_space<vmem>>, vector<8x3xf32>
    %c0_1 = arith.constant 0 : index
    %c0_2 = arith.constant 0 : index
    %1 = vector.load %arg4[%c0_1, %c0_2] : memref<8x1xf32, #tpu.memory_space<vmem>>, vector<8x1xf32>
    %c0_3 = arith.constant 0 : index
    %c0_4 = arith.constant 0 : index
    %c0_5 = arith.constant 0 : index
    %2 = vector.load %arg5[%c0_3, %c0_4, %c0_5] : memref<1x8x1156xf32, #tpu.memory_space<vmem>>, vector<1x8x1156xf32>
    %3 = vector.shape_cast %2 : vector<1x8x1156xf32> to vector<8x1156xf32>
    %4 = vector.broadcast %1 : vector<8x1xf32> to vector<8x1156xf32>
    %5 = arith.addf %4, %3 : vector<8x1156xf32>
    %6 = vector.extract_strided_slice %0 {offsets = [0, 0], sizes = [8, 1], strides = [1, 1]} : vector<8x3xf32> to vector<8x1xf32>
    %c0_6 = arith.constant 0 : index
    %c0_7 = arith.constant 0 : index
    %c0_8 = arith.constant 0 : index
    %7 = vector.load %arg2[%c0_6, %c0_7, %c0_8] : memref<1x3x1156xf32, #tpu.memory_space<vmem>>, vector<1x1x1156xf32>
    %8 = vector.shape_cast %7 : vector<1x1x1156xf32> to vector<1x1156xf32>
    %9 = vector.broadcast %6 : vector<8x1xf32> to vector<8x1156xf32>
    %10 = vector.broadcast %8 : vector<1x1156xf32> to vector<8x1156xf32>
    %11 = arith.mulf %9, %10 : vector<8x1156xf32>
    %12 = arith.addf %5, %11 : vector<8x1156xf32>
    %13 = vector.extract_strided_slice %0 {offsets = [0, 1], sizes = [8, 1], strides = [1, 1]} : vector<8x3xf32> to vector<8x1xf32>
    %c0_9 = arith.constant 0 : index
    %c1 = arith.constant 1 : index
    %c0_10 = arith.constant 0 : index
    %14 = vector.load %arg2[%c0_9, %c1, %c0_10] : memref<1x3x1156xf32, #tpu.memory_space<vmem>>, vector<1x1x1156xf32>
    %15 = vector.shape_cast %14 : vector<1x1x1156xf32> to vector<1x1156xf32>
    %16 = vector.broadcast %13 : vector<8x1xf32> to vector<8x1156xf32>
    %17 = vector.broadcast %15 : vector<1x1156xf32> to vector<8x1156xf32>
    %18 = arith.mulf %16, %17 : vector<8x1156xf32>
    %19 = arith.addf %12, %18 : vector<8x1156xf32>
    %20 = vector.extract_strided_slice %0 {offsets = [0, 2], sizes = [8, 1], strides = [1, 1]} : vector<8x3xf32> to vector<8x1xf32>
    %c0_11 = arith.constant 0 : index
    %c2 = arith.constant 2 : index
    %c0_12 = arith.constant 0 : index
    %21 = vector.load %arg2[%c0_11, %c2, %c0_12] : memref<1x3x1156xf32, #tpu.memory_space<vmem>>, vector<1x1x1156xf32>
    %22 = vector.shape_cast %21 : vector<1x1x1156xf32> to vector<1x1156xf32>
    %23 = vector.broadcast %20 : vector<8x1xf32> to vector<8x1156xf32>
    %24 = vector.broadcast %22 : vector<1x1156xf32> to vector<8x1156xf32>
    %25 = arith.mulf %23, %24 : vector<8x1156xf32>
    %26 = arith.addf %19, %25 : vector<8x1156xf32>
    %cst = arith.constant 0.000000e+00 : f32
    %27 = vector.broadcast %cst : f32 to vector<8x1156xf32>
    %28 = arith.maximumf %26, %27 : vector<8x1156xf32>
    %c0_13 = arith.constant 0 : index
    %c0_14 = arith.constant 0 : index
    %c0_15 = arith.constant 0 : index
    %29 = vector.load %arg6[%c0_13, %c0_14, %c0_15] : memref<1x8x1156xf32, #tpu.memory_space<vmem>>, vector<1x8x1156xf32>
    %30 = vector.shape_cast %29 : vector<1x8x1156xf32> to vector<8x1156xf32>
    %31 = vector.shape_cast %28 : vector<8x1156xf32> to vector<1x8x1156xf32>
    tpu.vector_store %arg6[%c0_13, %c0_14, %c0_15], %31 {strides = array<i32>} : memref<1x8x1156xf32, #tpu.memory_space<vmem>>, vector<1x8x1156xf32>,
    return
  }
  func.func @transform_0(%arg0: i32, %arg1: i32) -> (i32, i32, i32) {
    %c0_i32 = arith.constant 0 : i32
    %c0_i32_0 = arith.constant 0 : i32
    return %arg0, %c0_i32, %arg1 : i32, i32, i32
  }
  func.func @transform_1(%arg0: i32, %arg1: i32) -> (i32, i32) {
    %c0_i32 = arith.constant 0 : i32
    %c0_i32_0 = arith.constant 0 : i32
    %c0_i32_1 = arith.constant 0 : i32
    return %c0_i32, %c0_i32_0 : i32, i32
  }
  func.func @transform_2(%arg0: i32, %arg1: i32) -> (i32, i32) {
    %c0_i32 = arith.constant 0 : i32
    %c0_i32_0 = arith.constant 0 : i32
    %c0_i32_1 = arith.constant 0 : i32
    return %c0_i32, %c0_i32_0 : i32, i32
  }
  func.func @transform_3(%arg0: i32, %arg1: i32) -> (i32, i32, i32) {
    %c0_i32 = arith.constant 0 : i32
    %c0_i32_0 = arith.constant 0 : i32
    return %arg0, %c0_i32, %arg1 : i32, i32, i32
  }
  func.func @transform_4(%arg0: i32, %arg1: i32) -> (i32, i32, i32) {
    %c0_i32 = arith.constant 0 : i32
    %c0_i32_0 = arith.constant 0 : i32
    return %arg0, %c0_i32, %arg1 : i32, i32, i32
  }
}

</mosaic_0001>

<bundles_post_ra>
// kernel: model2_forward.1
= control target key start
LH: loop header
LB: loop body
LE: loop exit
PB: predicated region body
PF: predicated region fallthrough
CT: control target
= control target key end

     0   :  { %s766_s15 = smov 0   ;;  %s768_s16 = smov 0   ;;  %s941_s0 = inlined_call_operand.vmem [shape: f32[2,3,1156], index: 0, kind: input, shape index: {}]   ;;  %s942_s1 = inlined_call_operand.vmem [shape: f32[8,3], index: 1, kind: input, shape index: {}]   ;;  %s943_s2 = inlined_call_operand.vmem [shape: f32[8,1], index: 2, kind: input, shape index: {}]   ;;  %s944_s3 = inlined_call_operand.vmem [shape: f32[2,8,1156], index: 3, kind: input, shape index: {}]   ;;  %s945_s4 = inlined_call_operand.vmem [shape: f32[2,8,1156], index: 4, kind: output, shape index: {}]  }
   0x1   :  { %s770_s17 = smov 0  }
   0x2 LB: > { %s26_s18 = sadd.s32 1, %s732_s16  ;;  %p670_p0 = scmp.ge.s32.totalorder %s736_s17, 1  ;;  %s736_s17 = sphi %s770_s17, %s14_s17   ;;  %s732_s16 = sphi %s768_s16, %s955_s16   ;;  %s728_s15 = sphi %s766_s15, %s954_s15  }
   0x3   : > { %p28_p1 = scmp.ge.s32.totalorder %s26_s18, 2  ;;  %p200_p2 = scmp.lt.s32.totalorder %s736_s17, 3 }
   0x5   : > { %s957_s18 = smov (%p28_p1, %s26_s18), 0  ;;  %p201_p3 = pnand %p670_p0, %p200_p2 }
   0x6   : > { %v274_v0 = vld [vmem:[%s943_s2] sm:$0xff] (!%p201_p3)  ;;  %v738_v2 = vmov (!%p201_p3), 0   ;;  %v739_v3 = vmov (!%p201_p3), 1   ;;  %v740_v4 = vmov (!%p201_p3), 2   ;;  %p244_p4 = scmp.lt.s32.totalorder (!%p201_p3), %s728_s15, 1  ;;  %v310_v5 = vlaneseq (!%p201_p3) }
   0x7   : > { %204 = sbr.rel (%p201_p3) target bundleno = 162 (0xa2), region = 36  ;;  %v273_v1 = vld [vmem:[%s942_s1] sm:$0xff] (!%p201_p3)  ;;  %710 = vset.pattern.permute.xlu0 (!%p201_p3), %v738_v2  ;;  %711 = vset.pattern.permute.xlu1 (!%p201_p3), %v739_v3  ;;  %vm559_vm0 = vcmask (!%p201_p3), 31744  }
   0x8   : > { %287 = vperm.xlu0 (!%p201_p3), %710, %v274_v0   ;;  %385 = vperm.xlu1 (!%p201_p3), %711, %v273_v1   ;;  %v311_v6 = vshrl.u32 (!%p201_p3), %v310_v5, 7 }
   0xa   : > { %v798_v7 = vsub.s32 (!%p201_p3), 0, %v311_v6  ;;  %v800_v8 = vsub.s32 (!%p201_p3), 1, %v311_v6  ;;  %v802_v9 = vsub.s32 (!%p201_p3), 2, %v311_v6  ;;  %v804_v10 = vsub.s32 (!%p201_p3), 3, %v311_v6 }
   0xb   : > { %v806_v11 = vsub.s32 (!%p201_p3), 4, %v311_v6  ;;  %v808_v12 = vsub.s32 (!%p201_p3), 5, %v311_v6  ;;  %v811_v14 = vsub.s32 (!%p201_p3), 6, %v311_v6  ;;  %v813_v15 = vsub.s32 (!%p201_p3), 7, %v311_v6 }
   0xc   : > { %305 = vperm.xlu0 (!%p201_p3), %710, %v273_v1   ;;  %712 = vset.pattern.permute.xlu1 (!%p201_p3), %v740_v4 }
   0xd   : > { %465 = vperm.xlu1 (!%p201_p3), %712, %v273_v1  }
   0xe   : > { %s959_s15 = smov (!%p244_p4, %s728_s15), 1 }
   0xf   : > { %s681_s23 = smul.u32 40, %s959_s15 }
  0x10   : > { %713 = vset.pattern.permute.xlu0 %v740_v4  ;;  %s682_s27 = smul.u32 80, %s959_s15 }
  0x11   : > { %s796_s26 = scalar_lea.vmem %s941_s0, %s681_s23 }
  0x12   : > { %v675_v13 = vld [vmem:[%s796_s26 + $0x1] ss:$4 sm:$0xff]  ;;  %v820_v19 = vld [vmem:[%s796_s26] ss:$4 sm:$0xff]  ;;  %v834_v29 = vld [vmem:[%s796_s26 + $0x2] ss:$4 sm:$0xff]  ;;  %s841_s30 = scalar_lea.vmem %s944_s3, %s682_s27  ;;  %s271_s7 = scalar_lea.vmem %s945_s4, %s682_s27 }
  0x13   : > { %v676_v16 = vld [vmem:[%s796_s26 + $0x21] ss:$4 sm:$0x3]  ;;  %v393_v17 = vrot.slane %v675_v13, %v798_v7  ;;  %v397_v18 = vrot.slane %v675_v13, %v800_v8  ;;  %v401_v20 = vrot.slane %v675_v13, %v802_v9  ;;  %v405_v21 = vrot.slane %v675_v13, %v804_v10  ;;  %v831_v28 = vld [vmem:[%s796_s26 + $0x20] ss:$4 sm:$0x3] }
  0x14   : > { %v409_v22 = vrot.slane %v675_v13, %v806_v11  ;;  %v413_v23 = vrot.slane %v675_v13, %v808_v12  ;;  %v417_v24 = vrot.slane %v675_v13, %v811_v14  ;;  %v421_v25 = vrot.slane %v675_v13, %v813_v15  ;;  %v860_v38 = vld [vmem:[%s796_s26 + $0x22] ss:$4 sm:$0x3]  ;;  %v276_v50 = vld [vmem:[%s841_s30 + $0x8] sm:$0xff]  ;;  %v277_v51 = vld [vmem:[%s841_s30 + $0x10] sm:$0xff] }
  0x15   : > { %v425_v26 = vrot.slane %v676_v16, %v798_v7  ;;  %v429_v27 = vrot.slane %v676_v16, %v800_v8  ;;  %v313_v30 = vrot.slane %v820_v19, %v798_v7  ;;  %v317_v31 = vrot.slane %v820_v19, %v800_v8  ;;  %v275_v43 = vld [vmem:[%s841_s30] sm:$0xff]  ;;  %v278_v52 = vld [vmem:[%s841_s30 + $0x18] sm:$0xff]  ;;  %v280_v62 = vld [vmem:[%s841_s30 + $0x28] sm:$0xff] }
  0x16   : > { %v321_v32 = vrot.slane %v820_v19, %v802_v9  ;;  %v325_v33 = vrot.slane %v820_v19, %v804_v10  ;;  %v329_v34 = vrot.slane %v820_v19, %v806_v11  ;;  %v333_v35 = vrot.slane %v820_v19, %v808_v12  ;;  %v279_v61 = vld [vmem:[%s841_s30 + $0x20] sm:$0xff]  ;;  %v281_v63 = vld [vmem:[%s841_s30 + $0x30] sm:$0xff]  ;;  %v282_v4 = vld [vmem:[%s841_s30 + $0x38] sm:$0xff] }
  0x17   : > { %v337_v36 = vrot.slane %v820_v19, %v811_v14  ;;  %v341_v37 = vrot.slane %v820_v19, %v813_v15  ;;  %v345_v39 = vrot.slane %v831_v28, %v798_v7  ;;  %v349_v40 = vrot.slane %v831_v28, %v800_v8  ;;  %v283_v5 = vld [vmem:[%s841_s30 + $0x40] sm:$0xff]  ;;  %v284_v6 = vld [vmem:[%s841_s30 + $0x48] sm:$0xff] }
  0x18   : > { %v473_v41 = vrot.slane %v834_v29, %v798_v7  ;;  %v477_v42 = vrot.slane %v834_v29, %v800_v8 }
  0x87   : > { %v288_v48 = vpop.permute.xlu0 %287  ;;  %v386_v49 = vpop.permute.xlu1 %385 }
  0x88   : > { %v440_v57 = vmul.f32 %v393_v17, %v386_v49  ;;  %v441_v58 = vmul.f32 %v397_v18, %v386_v49  ;;  %v442_v59 = vmul.f32 %v401_v20, %v386_v49  ;;  %v443_v60 = vmul.f32 %v405_v21, %v386_v49 }
  0x89   : > { %v444_v0 = vmul.f32 %v409_v22, %v386_v49  ;;  %v445_v1 = vmul.f32 %v413_v23, %v386_v49  ;;  %v446_v2 = vmul.f32 %v417_v24, %v386_v49  ;;  %v447_v3 = vmul.f32 %v421_v25, %v386_v49 }
  0x8a   : > { %v448_v13 = vmul.f32 %v425_v26, %v386_v49  ;;  %v449_v16 = vmul.f32 %v429_v27, %v386_v49  ;;  %v290_v19 = vadd.f32 %v288_v48, %v275_v43  ;;  %v291_v28 = vadd.f32 %v288_v48, %v276_v50 }
  0x8b   : > { %v306_v55 = vpop.permute.xlu0 %305  ;;  %v292_v56 = vadd.f32 %v288_v48, %v277_v51  ;;  %v293_v17 = vadd.f32 %v288_v48, %v278_v52  ;;  %v294_v18 = vadd.f32 %v288_v48, %v279_v61  ;;  %v295_v20 = vadd.f32 %v288_v48, %v280_v62 }
  0x8c   : > { %v296_v21 = vadd.f32 %v288_v48, %v281_v63  ;;  %v297_v54 = vadd.f32 %v288_v48, %v282_v4  ;;  %v298_v53 = vadd.f32 %v288_v48, %v283_v5  ;;  %v299_v47 = vadd.f32 %v288_v48, %v284_v6 }
  0x8d   : > { %v360_v22 = vmul.f32 %v313_v30, %v306_v55  ;;  %v361_v23 = vmul.f32 %v317_v31, %v306_v55  ;;  %v362_v24 = vmul.f32 %v321_v32, %v306_v55  ;;  %v363_v25 = vmul.f32 %v325_v33, %v306_v55  ;;  %v466_v30 = vpop.permute.xlu1 %465 }
  0x8e   : > { %v364_v46 = vmul.f32 %v329_v34, %v306_v55  ;;  %v365_v45 = vmul.f32 %v333_v35, %v306_v55  ;;  %v366_v44 = vmul.f32 %v337_v36, %v306_v55  ;;  %v367_v26 = vmul.f32 %v341_v37, %v306_v55 }
  0x8f   : > { %v368_v27 = vmul.f32 %v345_v39, %v306_v55  ;;  %v369_v43 = vmul.f32 %v349_v40, %v306_v55  ;;  %v370_v49 = vadd.f32 %v360_v22, %v290_v19  ;;  %v371_v50 = vadd.f32 %v361_v23, %v291_v28 }
  0x90   : > { %v372_v51 = vadd.f32 %v362_v24, %v292_v56  ;;  %v373_v52 = vadd.f32 %v363_v25, %v293_v17  ;;  %v374_v61 = vadd.f32 %v364_v46, %v294_v18  ;;  %v375_v62 = vadd.f32 %v365_v45, %v295_v20 }
  0x91   : > { %v376_v63 = vadd.f32 %v366_v44, %v296_v21  ;;  %v377_v4 = vadd.f32 %v367_v26, %v297_v54  ;;  %v378_v5 = vadd.f32 %v368_v27, %v298_v53  ;;  %v379_v48 = vadd.f32 %v369_v43, %v299_v47 }
  0x92   : > { %v450_v31 = vadd.f32 %v440_v57, %v370_v49  ;;  %v451_v32 = vadd.f32 %v441_v58, %v371_v50  ;;  %v452_v33 = vadd.f32 %v442_v59, %v372_v51  ;;  %v453_v34 = vadd.f32 %v443_v60, %v373_v52 }
  0x93   : > { %v454_v35 = vadd.f32 %v444_v0, %v374_v61  ;;  %v455_v36 = vadd.f32 %v445_v1, %v375_v62  ;;  %v456_v37 = vadd.f32 %v446_v2, %v376_v63  ;;  %v457_v39 = vadd.f32 %v447_v3, %v377_v4 }
  0x94   : > { %v458_v40 = vadd.f32 %v448_v13, %v378_v5  ;;  %v459_v55 = vadd.f32 %v449_v16, %v379_v48  ;;  %v520_v44 = vmul.f32 %v473_v41, %v466_v30  ;;  %v521_v45 = vmul.f32 %v477_v42, %v466_v30 }
  0x95   : > { %v946_v46 = vrot.slane %v834_v29, %v802_v9  ;;  %v947_v53 = vrot.slane %v834_v29, %v804_v10  ;;  %v948_v56 = vrot.slane %v834_v29, %v806_v11  ;;  %v949_v58 = vrot.slane %v834_v29, %v808_v12 }
  0x96   : > { %v950_v59 = vrot.slane %v834_v29, %v811_v14  ;;  %v951_v9 = vrot.slane %v834_v29, %v813_v15  ;;  %v952_v10 = vrot.slane %v860_v38, %v798_v7  ;;  %v953_v11 = vrot.slane %v860_v38, %v800_v8 }
  0x97   : > { %v522_v47 = vmul.f32 %v946_v46, %v466_v30  ;;  %v523_v54 = vmul.f32 %v947_v53, %v466_v30  ;;  %v524_v57 = vmul.f32 %v948_v56, %v466_v30  ;;  %v525_v41 = vmul.f32 %v949_v58, %v466_v30 }
  0x98   : > { %v526_v42 = vmul.f32 %v950_v59, %v466_v30  ;;  %v527_v60 = vmul.f32 %v951_v9, %v466_v30  ;;  %v528_v0 = vmul.f32 %v952_v10, %v466_v30  ;;  %v529_v1 = vmul.f32 %v953_v11, %v466_v30 }
  0x99   : > { %v530_v2 = vadd.f32 %v520_v44, %v450_v31  ;;  %v531_v3 = vadd.f32 %v521_v45, %v451_v32  ;;  %v532_v12 = vadd.f32 %v522_v47, %v452_v33  ;;  %v533_v6 = vadd.f32 %v523_v54, %v453_v34 }
  0x9a   : > { %v534_v14 = vadd.f32 %v524_v57, %v454_v35  ;;  %v535_v15 = vadd.f32 %v525_v41, %v455_v36  ;;  %v536_v29 = vadd.f32 %v526_v42, %v456_v37  ;;  %v537_v13 = vadd.f32 %v527_v60, %v457_v39 }
  0x9b   : > { %v538_v16 = vadd.f32 %v528_v0, %v458_v40  ;;  %v539_v7 = vadd.f32 %v529_v1, %v459_v55  ;;  %v540_v19 = vmax.f32 %v530_v2, 0.0  ;;  %v541_v28 = vmax.f32 %v531_v3, 0.0 }
  0x9c   : > { %v542_v17 = vmax.f32 %v532_v12, 0.0  ;;  %v543_v8 = vmax.f32 %v533_v6, 0.0  ;;  %v544_v38 = vmax.f32 %v534_v14, 0.0  ;;  %v545_v18 = vmax.f32 %v535_v15, 0.0 }
  0x9d   : > { %v546_v20 = vmax.f32 %v536_v29, 0.0  ;;  %v547_v21 = vmax.f32 %v537_v13, 0.0  ;;  %v548_v22 = vmax.f32 %v538_v16, 0.0  ;;  %v549_v23 = vmax.f32 %v539_v7, 0.0  ;;  %550 = vst [vmem:[%s271_s7] sm:$0xff] %v540_v19  ;;  %551 = vst [vmem:[%s271_s7 + $0x8] sm:$0xff] %v541_v28 }
  0x9e   : > { %552 = vst [vmem:[%s271_s7 + $0x10] sm:$0xff] %v542_v17  ;;  %553 = vst [vmem:[%s271_s7 + $0x18] sm:$0xff] %v543_v8 }
  0x9f   : > { %554 = vst [vmem:[%s271_s7 + $0x20] sm:$0xff] %v544_v38  ;;  %555 = vst [vmem:[%s271_s7 + $0x28] sm:$0xff] %v545_v18 }
  0xa0   : > { %556 = vst [vmem:[%s271_s7 + $0x30] sm:$0xff] %v546_v20  ;;  %557 = vst [vmem:[%s271_s7 + $0x38] sm:$0xff] %v547_v21 }
  0xa1   : > { %558 = vst [vmem:[%s271_s7 + $0x40] sm:$0xff] %v548_v22  ;;  %560 = vst.msk [vmem:[%s271_s7 + $0x48] sm:$0xff] %vm559_vm0, %v549_v23 }
  0xa2 PF: > { %s14_s17 = sadd.s32 1, %s736_s17   ;;  %s954_s15 = smov %s732_s16 }
  0xa3   : > { %p11_p5 = scmp.ge.s32.totalorder %s14_s17, 4   ;;  %s955_s16 = smov %s957_s18 }
  0xa5   :  { %13 = sbr.rel (!%p11_p5) target bundleno = 2 (0x2), region = 74 }

</bundles_post_ra>
